<compile_context>
chip_gen: v6e
topology: v6e:2x2x1
jax: 0.10.0
libtpu: 0.0.40
codegen_flags: <defaults>
</compile_context>

<pallas_src>
import functools

import jax
import jax.numpy as jnp
from jax.experimental import pallas as pl
from jax.experimental.pallas import tpu as pltpu

_LANES = 128


def _round_up(x, m):
    return (x + m - 1) // m * m


def _sublane_multiple(dtype):
    # Native (sublane, lane) tile: f32 -> (8,128), bf16 -> (16,128), int8/bool -> (32,128).
    return max(8, 32 // max(1, jnp.dtype(dtype).itemsize))


def _device_plan():
    """Generation-aware split / tile-budget plan."""
    try:
        kind = jax.devices()[0].device_kind.lower()
    except Exception:  # defensive: fall through to conservative defaults
        kind = ""
    if "v7" in kind:
        # 2 TensorCores per chip: genuinely shard the leading axis across cores.
        core = getattr(pltpu, "CORE_PARALLEL", "parallel")
        arb = getattr(pltpu, "ARBITRARY", "arbitrary")
        return dict(num_splits=2, dim_semantics=(core, arb),
                    per_buffer_bytes=4 << 20)   # 2 in x 2 bufs = 16 MiB << 64 MiB VMEM
    if "v6" in kind:
        return dict(num_splits=1, dim_semantics=("arbitrary", "arbitrary"),
                    per_buffer_bytes=4 << 20)
    # v5e / unknown: single TensorCore, smaller tiles.
    return dict(num_splits=1, dim_semantics=("arbitrary", "arbitrary"),
                per_buffer_bytes=2 << 20)


def _focal_partial_kernel(x_ref, t_ref, o_ref, *, n_elems, block_rows,
                          split_steps, n_blocks):
    s = pl.program_id(0)          # core split (size 1 on v5e/v6e)
    step = pl.program_id(1)       # reduction step within the split

    @pl.when(step == 0)
    def _():
        o_ref[...] = jnp.zeros_like(o_ref)

    logical_block = s * split_steps + step

    def log_likelihood():
        # Positive log-likelihood form of BCE (negation folded into the wrapper):
        #   ll = t*log(x) + (1-t)*log(1-x) = log(1-x) + t*(log(x) - log(1-x))
        # with torch-style clamping of the logs at -100.
        x = x_ref[...].astype(jnp.float32)
        tgt = t_ref[...].astype(jnp.float32)
        log_x = jnp.maximum(jnp.log(x), -100.0)
        log_1mx = jnp.maximum(jnp.log(1.0 - x), -100.0)
        return log_1mx + tgt * (log_x - log_1mx)

    def accumulate(ll):
        # Fold the (block_rows, 128) tile into the resident (1, 8, 128)
        # accumulator block with plain vector adds (tile-preserving reshape).
        o_ref[...] += ll.reshape(block_rows // 8, 8, _LANES).sum(axis=0)[None]

    # Interior blocks: every element is valid -> no masking on the hot path.
    @pl.when(logical_block < n_blocks - 1)
    def _():
        accumulate(log_likelihood())

    # The single boundary block: mask lane padding (n % 128) and rows past the
    # end of the blocked dimension (block may overrun `rows`).
    @pl.when(logical_block == n_blocks - 1)
    def _():
        ll = log_likelihood()
        row = (jax.lax.broadcasted_iota(jnp.int32, ll.shape, 0)
               + logical_block * block_rows)
        lane = jax.lax.broadcasted_iota(jnp.int32, ll.shape, 1)
        n_full_rows = n_elems // _LANES
        rem = n_elems % _LANES
        valid = (row < n_full_rows) | ((row == n_full_rows) & (lane < rem))
        accumulate(jnp.where(valid, ll, 0.0))

    # logical_block >= n_blocks (clamped duplicated block of the core split):
    # all compute skipped; its output block was zeroed at step == 0.


def focal_loss(inputs, targets, gamma):
    """Pallas TPU implementation of FocalLoss.forward.

    inputs, targets: same shape (any rank, e.g. NCHW); inputs are probabilities
    in (0, 1), targets in [0, 1]. Returns a scalar float32.
    """
    assert inputs.shape == targets.shape
    n = inputs.size
    if n == 0:
        return jnp.float32(float("nan"))  # torch: mean over empty -> nan

    plan = _device_plan()
    num_splits = plan["num_splits"]

    x = inputs.reshape(-1)
    t = targets.reshape(-1)

    # Pad (copies) only when n is not lane-aligned; padded content is masked
    # in-kernel so its value is irrelevant.
    pad = (-n) % _LANES
    if pad:
        x = jnp.pad(x, (0, pad))
        t = jnp.pad(t, (0, pad))
    rows = (n + pad) // _LANES
    x2 = x.reshape(rows, _LANES)
    t2 = t.reshape(rows, _LANES)

    # Byte-budget -> dtype-aware block rows (sublane-aligned): narrower inputs
    # (bf16/int8 targets) automatically get proportionally more rows per tile.
    align = max(_sublane_multiple(x2.dtype), _sublane_multiple(t2.dtype))
    max_item = max(x2.dtype.itemsize, t2.dtype.itemsize)
    budget_rows = max(
        align, plan["per_buffer_bytes"] // (_LANES * max_item) // align * align)
    block_rows = min(budget_rows, _round_up(rows, align))
    n_blocks = pl.cdiv(rows, block_rows)
    split_steps = pl.cdiv(n_blocks, num_splits)

    # 2 double-buffered inputs + resident output block + slack.
    in_vmem = 2 * block_rows * _LANES * (x2.dtype.itemsize + t2.dtype.itemsize)
    vmem_limit = int(min(max(in_vmem + (8 << 20), 16 << 20), 30 << 20))

    def in_map(s, step):
        # Clamp so overflow blocks of the core split re-read a valid block;
        # their compute is skipped in-kernel.
        return (jnp.minimum(s * split_steps + step, n_blocks - 1), 0)

    kernel = functools.partial(
        _focal_partial_kernel,
        n_elems=n, block_rows=block_rows,
        split_steps=split_steps, n_blocks=n_blocks)

    partials = pl.pallas_call(
        kernel,
        out_shape=jax.ShapeDtypeStruct((num_splits, 8, _LANES), jnp.float32),
        grid_spec=pltpu.PrefetchScalarGridSpec(
            num_scalar_prefetch=0,
            grid=(num_splits, split_steps),
            in_specs=[
                pl.BlockSpec((block_rows, _LANES), in_map),
                pl.BlockSpec((block_rows, _LANES), in_map),
            ],
            out_specs=pl.BlockSpec((1, 8, _LANES), lambda s, step: (s, 0, 0)),
        ),
        compiler_params=pltpu.CompilerParams(
            dimension_semantics=plan["dim_semantics"],
            vmem_limit_bytes=vmem_limit,
        ),
    )(x2, t2)

    # Tiny scalar epilogue: full reduce, single negation (-> BCE mean), focal transform.
    mean_bce = -jnp.sum(partials) / jnp.float32(n)
    pt = jnp.exp(-mean_bce)
    return (1.0 - pt) ** jnp.float32(gamma) * mean_bce


def _reference_focal_loss(inputs, targets, gamma):
    x = inputs.astype(jnp.float32)
    t = targets.astype(jnp.float32)
    bce = -jnp.mean(t * jnp.maximum(jnp.log(x), -100.0)
                    + (1.0 - t) * jnp.maximum(jnp.log(1.0 - x), -100.0))
    pt = jnp.exp(-bce)
    return (1.0 - pt) ** gamma * bce


if __name__ == "__main__":
    gamma = 2.0  # FocalLoss(gamma=2.0)

    key = jax.random.PRNGKey(0)
    k1, k2, k3, k4, k5, k6 = jax.random.split(key, 6)

    # Primary example: NCHW sigmoid probabilities + binary targets.
    shape = (2, 4, 16, 16)
    inputs = jax.nn.sigmoid(jax.random.normal(k1, shape, dtype=jnp.float32))
    targets = (jax.random.uniform(k2, shape) > 0.5).astype(jnp.float32)
    out = jax.block_until_ready(focal_loss(inputs, targets, gamma))
    ref = _reference_focal_loss(inputs, targets, gamma)
    assert jnp.allclose(out, ref, rtol=1e-5, atol=1e-6), (out, ref)

    # Lane-aligned but non-multiple-of-8 row count (rows=11): exercises the
    # partial final block / OOB-row masking path.
    shape2 = (4, 352)  # 1408 elements
    inputs2 = jax.nn.sigmoid(jax.random.normal(k3, shape2, dtype=jnp.float32))
    targets2 = (jax.random.uniform(k4, shape2) > 0.5).astype(jnp.float32)
    out2 = jax.block_until_ready(focal_loss(inputs2, targets2, gamma))
    ref2 = _reference_focal_loss(inputs2, targets2, gamma)
    assert jnp.allclose(out2, ref2, rtol=1e-5, atol=1e-6), (out2, ref2)

    # Lane-misaligned element count (105): exercises the lane-padding mask.
    shape3 = (3, 5, 7)
    inputs3 = jax.nn.sigmoid(jax.random.normal(k5, shape3, dtype=jnp.float32))
    targets3 = (jax.random.uniform(k6, shape3) > 0.5).astype(jnp.float32)
    out3 = jax.block_until_ready(focal_loss(inputs3, targets3, gamma))
    ref3 = _reference_focal_loss(inputs3, targets3, gamma)
    assert jnp.allclose(out3, ref3, rtol=1e-5, atol=1e-6), (out3, ref3)

    print("KERNEL_OK")
</pallas_src>

<mosaic_0001>
module attributes {stable_mosaic.version = 11 : i64} {
  func.func @_focal_partial_kernel(%arg0: i32, %arg1: i32, %arg2: memref<16x128xf32, #tpu.memory_space<vmem>>, %arg3: memref<16x128xf32, #tpu.memory_space<vmem>>, %arg4: memref<1x8x128xf32, #tpu.memory_space<vmem>>) attributes {dimension_semantics = [#tpu.dimension_semantics<arbitrary>, #tpu.dimension_semantics<arbitrary>], iteration_bounds = array<i64: 1, 1>, scalar_prefetch = 0 : i64, scratch_operands = 0 : i64, tpu.core_type = #tpu.core_type<tc>, window_params = [{transform_indices = @transform_0, window_bounds = array<i64: 16, 128>}, {transform_indices = @transform_1, window_bounds = array<i64: 16, 128>}, {transform_indices = @transform_2, window_bounds = array<i64: 1, 8, 128>}]} {
    %c0_i32 = arith.constant 0 : i32
    %0 = arith.cmpi eq, %arg1, %c0_i32 : i32
    %1 = arith.extui %0 : i1 to i32
    %c0_i32_0 = arith.constant 0 : i32
    %2 = arith.cmpi ne, %1, %c0_i32_0 : i32
    scf.if %2 {
      %cst = arith.constant 0.000000e+00 : f32
      %11 = vector.broadcast %cst : f32 to vector<1x8x128xf32>
      %c0 = arith.constant 0 : index
      %c0_5 = arith.constant 0 : index
      %c0_6 = arith.constant 0 : index
      %12 = vector.load %arg4[%c0, %c0_5, %c0_6] : memref<1x8x128xf32, #tpu.memory_space<vmem>>, vector<1x8x128xf32>
      tpu.vector_store %arg4[%c0, %c0_5, %c0_6], %11 {strides = array<i32>} : memref<1x8x128xf32, #tpu.memory_space<vmem>>, vector<1x8x128xf32>,
    } else {
    }
    %c1_i32 = arith.constant 1 : i32
    %3 = arith.muli %arg0, %c1_i32 : i32
    %4 = arith.addi %3, %arg1 : i32
    %c0_i32_1 = arith.constant 0 : i32
    %5 = arith.cmpi slt, %4, %c0_i32_1 : i32
    %6 = arith.extui %5 : i1 to i32
    %c0_i32_2 = arith.constant 0 : i32
    %7 = arith.cmpi ne, %6, %c0_i32_2 : i32
    scf.if %7 {
      %c0 = arith.constant 0 : index
      %c0_5 = arith.constant 0 : index
      %11 = vector.load %arg2[%c0, %c0_5] : memref<16x128xf32, #tpu.memory_space<vmem>>, vector<16x128xf32>
      %c0_6 = arith.constant 0 : index
      %c0_7 = arith.constant 0 : index
      %12 = vector.load %arg3[%c0_6, %c0_7] : memref<16x128xf32, #tpu.memory_space<vmem>>, vector<16x128xf32>
      %13 = math.log %11 : vector<16x128xf32>
      %cst = arith.constant -1.000000e+02 : f32
      %14 = vector.broadcast %cst : f32 to vector<16x128xf32>
      %15 = arith.maximumf %13, %14 : vector<16x128xf32>
      %cst_8 = arith.constant 1.000000e+00 : f32
      %16 = vector.broadcast %cst_8 : f32 to vector<16x128xf32>
      %17 = arith.subf %16, %11 : vector<16x128xf32>
      %18 = math.log %17 : vector<16x128xf32>
      %cst_9 = arith.constant -1.000000e+02 : f32
      %19 = vector.broadcast %cst_9 : f32 to vector<16x128xf32>
      %20 = arith.maximumf %18, %19 : vector<16x128xf32>
      %21 = arith.subf %15, %20 : vector<16x128xf32>
      %22 = arith.mulf %12, %21 : vector<16x128xf32>
      %23 = arith.addf %20, %22 : vector<16x128xf32>
      %c0_10 = arith.constant 0 : index
      %c0_11 = arith.constant 0 : index
      %c0_12 = arith.constant 0 : index
      %24 = vector.load %arg4[%c0_10, %c0_11, %c0_12] : memref<1x8x128xf32, #tpu.memory_space<vmem>>, vector<1x8x128xf32>
      %25 = vector.shape_cast %23 : vector<16x128xf32> to vector<2x8x128xf32>
      %cst_13 = arith.constant dense<0.000000e+00> : vector<8x128xf32>
      %26 = vector.multi_reduction <add>, %25, %cst_13 [0] : vector<2x8x128xf32> to vector<8x128xf32>
      %27 = vector.shape_cast %26 : vector<8x128xf32> to vector<1x8x128xf32>
      %28 = arith.addf %24, %27 : vector<1x8x128xf32>
      %c0_14 = arith.constant 0 : index
      %c0_15 = arith.constant 0 : index
      %c0_16 = arith.constant 0 : index
      %29 = vector.load %arg4[%c0_14, %c0_15, %c0_16] : memref<1x8x128xf32, #tpu.memory_space<vmem>>, vector<1x8x128xf32>
      tpu.vector_store %arg4[%c0_14, %c0_15, %c0_16], %28 {strides = array<i32>} : memref<1x8x128xf32, #tpu.memory_space<vmem>>, vector<1x8x128xf32>,
    } else {
    }
    %c0_i32_3 = arith.constant 0 : i32
    %8 = arith.cmpi eq, %4, %c0_i32_3 : i32
    %9 = arith.extui %8 : i1 to i32
    %c0_i32_4 = arith.constant 0 : i32
    %10 = arith.cmpi ne, %9, %c0_i32_4 : i32
    scf.if %10 {
      %c0 = arith.constant 0 : index
      %c0_5 = arith.constant 0 : index
      %11 = vector.load %arg2[%c0, %c0_5] : memref<16x128xf32, #tpu.memory_space<vmem>>, vector<16x128xf32>
      %c0_6 = arith.constant 0 : index
      %c0_7 = arith.constant 0 : index
      %12 = vector.load %arg3[%c0_6, %c0_7] : memref<16x128xf32, #tpu.memory_space<vmem>>, vector<16x128xf32>
      %13 = math.log %11 : vector<16x128xf32>
      %cst = arith.constant -1.000000e+02 : f32
      %14 = vector.broadcast %cst : f32 to vector<16x128xf32>
      %15 = arith.maximumf %13, %14 : vector<16x128xf32>
      %cst_8 = arith.constant 1.000000e+00 : f32
      %16 = vector.broadcast %cst_8 : f32 to vector<16x128xf32>
      %17 = arith.subf %16, %11 : vector<16x128xf32>
      %18 = math.log %17 : vector<16x128xf32>
      %cst_9 = arith.constant -1.000000e+02 : f32
      %19 = vector.broadcast %cst_9 : f32 to vector<16x128xf32>
      %20 = arith.maximumf %18, %19 : vector<16x128xf32>
      %21 = arith.subf %15, %20 : vector<16x128xf32>
      %22 = arith.mulf %12, %21 : vector<16x128xf32>
      %23 = arith.addf %20, %22 : vector<16x128xf32>
      %24 = tpu.iota {dimensions = array<i32: 0>} : vector<16x128xi32>
      %c16_i32 = arith.constant 16 : i32
      %25 = arith.muli %4, %c16_i32 : i32
      %26 = vector.broadcast %25 : i32 to vector<16x128xi32>
      %27 = arith.addi %24, %26 : vector<16x128xi32>
      %28 = tpu.iota {dimensions = array<i32: 1>} : vector<16x128xi32>
      %c16_i32_10 = arith.constant 16 : i32
      %29 = vector.broadcast %c16_i32_10 : i32 to vector<16x128xi32>
      %30 = arith.cmpi slt, %27, %29 : vector<16x128xi32>
      %c16_i32_11 = arith.constant 16 : i32
      %31 = vector.broadcast %c16_i32_11 : i32 to vector<16x128xi32>
      %32 = arith.cmpi eq, %27, %31 : vector<16x128xi32>
      %c0_i32_12 = arith.constant 0 : i32
      %33 = vector.broadcast %c0_i32_12 : i32 to vector<16x128xi32>
      %34 = arith.cmpi slt, %28, %33 : vector<16x128xi32>
      %35 = arith.andi %32, %34 : vector<16x128xi1>
      %36 = arith.ori %30, %35 : vector<16x128xi1>
      %cst_13 = arith.constant 0.000000e+00 : f32
      %37 = vector.broadcast %cst_13 : f32 to vector<16x128xf32>
      %38 = arith.select %36, %23, %37 : vector<16x128xi1>, vector<16x128xf32>
      %c0_14 = arith.constant 0 : index
      %c0_15 = arith.constant 0 : index
      %c0_16 = arith.constant 0 : index
      %39 = vector.load %arg4[%c0_14, %c0_15, %c0_16] : memref<1x8x128xf32, #tpu.memory_space<vmem>>, vector<1x8x128xf32>
      %40 = vector.shape_cast %38 : vector<16x128xf32> to vector<2x8x128xf32>
      %cst_17 = arith.constant dense<0.000000e+00> : vector<8x128xf32>
      %41 = vector.multi_reduction <add>, %40, %cst_17 [0] : vector<2x8x128xf32> to vector<8x128xf32>
      %42 = vector.shape_cast %41 : vector<8x128xf32> to vector<1x8x128xf32>
      %43 = arith.addf %39, %42 : vector<1x8x128xf32>
      %c0_18 = arith.constant 0 : index
      %c0_19 = arith.constant 0 : index
      %c0_20 = arith.constant 0 : index
      %44 = vector.load %arg4[%c0_18, %c0_19, %c0_20] : memref<1x8x128xf32, #tpu.memory_space<vmem>>, vector<1x8x128xf32>
      tpu.vector_store %arg4[%c0_18, %c0_19, %c0_20], %43 {strides = array<i32>} : memref<1x8x128xf32, #tpu.memory_space<vmem>>, vector<1x8x128xf32>,
    } else {
    }
    return
  }
  func.func @transform_0(%arg0: i32, %arg1: i32) -> (i32, i32) {
    %c1_i32 = arith.constant 1 : i32
    %0 = arith.muli %arg0, %c1_i32 : i32
    %1 = arith.addi %0, %arg1 : i32
    %c0_i32 = arith.constant 0 : i32
    %2 = arith.minsi %1, %c0_i32 : i32
    %c0_i32_0 = arith.constant 0 : i32
    %c0_i32_1 = arith.constant 0 : i32
    return %2, %c0_i32_0 : i32, i32
  }
  func.func @transform_1(%arg0: i32, %arg1: i32) -> (i32, i32) {
    %c1_i32 = arith.constant 1 : i32
    %0 = arith.muli %arg0, %c1_i32 : i32
    %1 = arith.addi %0, %arg1 : i32
    %c0_i32 = arith.constant 0 : i32
    %2 = arith.minsi %1, %c0_i32 : i32
    %c0_i32_0 = arith.constant 0 : i32
    %c0_i32_1 = arith.constant 0 : i32
    return %2, %c0_i32_0 : i32, i32
  }
  func.func @transform_2(%arg0: i32, %arg1: i32) -> (i32, i32, i32) {
    %c0_i32 = arith.constant 0 : i32
    %c0_i32_0 = arith.constant 0 : i32
    %c0_i32_1 = arith.constant 0 : i32
    return %arg0, %c0_i32, %c0_i32_0 : i32, i32, i32
  }
}

</mosaic_0001>

<bundles_post_ra>
// kernel: tpu_custom_call.1
= control target key start
LH: loop header
LB: loop body
LE: loop exit
PB: predicated region body
PF: predicated region fallthrough
CT: control target
= control target key end

     0   :  { %7 = vsyncpa [#allocation3], 0  ;;  %s279_s0 = inlined_call_operand.hbm [shape: f32[16,128], index: 0, kind: input, shape index: {}]   ;;  %s280_s1 = inlined_call_operand.hbm [shape: f32[16,128], index: 1, kind: input, shape index: {}]   ;;  %s281_s2 = inlined_call_operand.hbm [shape: f32[1,8,128], index: 2, kind: output, shape index: {}]  }
   0x1   :  { %8 = vsyncpa [#allocation6], 0 }
   0x2   :  { %9 = vsyncpa [#allocation4], 0  ;;  %s250_s9 = smov [#allocation2]  }
   0x3   :  { %s21_s10 = sshll.u32 %s250_s9, 4  ;;  %s22_s10 = int_to_ptr.vmem [resolvable:$true] %s21_s10 }
   0x4   :  { %s192_s11 = scalar_lea.vmem %s22_s10, 256  ;;  %p197_p1 = scmp.lt.s32.totalorder %s22_s10, %s22_s10 }
   0x5   :  { %p193_p0 = scmp.ne.s32.totalorder %s22_s10, %s192_s11  ;;  %p198_p2 = scmp.lt.s32.totalorder %s192_s11, %s192_s11 }
   0x7   :  { %p199_p3 = por %p198_p2, %p197_p1 }
   0x9   :  { %p200_p4 = pnand %p199_p3, %p193_p0 }
   0xb   :  { %203 = shalt.err (!%p200_p4)
}
   0xc   :  { %s251_s12 = smov 128   ;;  %s252_s13 = smov 8  }
   0xd   :  { %27 = dma.hbm_to_vmem [thread:$0]  %s279_s0, 256, %s22_s10, [#allocation3], %s251_s12, %s251_s12, %s252_s13  }
   0xe   :  { %s253_s16 = smov [#allocation5]  }
   0xf   :  { %s39_s17 = sshll.u32 %s253_s16, 4  ;;  %s40_s17 = int_to_ptr.vmem [resolvable:$true] %s39_s17 }
  0x10   :  { %s212_s18 = scalar_lea.vmem %s40_s17, 256  ;;  %p217_p6 = scmp.lt.s32.totalorder %s40_s17, %s40_s17 }
  0x11   :  { %p213_p5 = scmp.ne.s32.totalorder %s40_s17, %s212_s18  ;;  %p218_p7 = scmp.lt.s32.totalorder %s212_s18, %s212_s18 }
  0x13   :  { %p219_p8 = por %p218_p7, %p217_p6 }
  0x15   :  { %p220_p9 = pnand %p219_p8, %p213_p5 }
  0x17   :  { %223 = shalt.err (!%p220_p9)
}
  0x18   :  { %45 = dma.hbm_to_vmem [thread:$0]  %s280_s1, 256, %s40_s17, [#allocation6], %s251_s12, %s251_s12, %s252_s13  }
  0x19   :  { %244 = dma.done.wait [#allocation3], 256  }
  0x1a   :  { %245 = vsyncadd [#allocation3], 4294967040 }
  0x1b   :  { %246 = dma.done.wait [#allocation6], 256  }
  0x1c   :  { %247 = vsyncadd [#allocation6], 4294967040  ;;  %v102_v0 = vld [vmem:[#allocation2] sm:$0xff]  ;;  %v103_v1 = vld [vmem:[#allocation2 + $0x8] sm:$0xff]  ;;  %s254_s0 = smov [#allocation7]  }
  0x1d   :  { %176 = vlog2.f32 %v102_v0  ;;  %v112_v2 = vsub.f32 1.0, %v102_v0  ;;  %v113_v3 = vsub.f32 1.0, %v103_v1  ;;  %v104_v15 = vld [vmem:[#allocation5] sm:$0xff]  ;;  %v105_v17 = vld [vmem:[#allocation5 + $0x8] sm:$0xff]  ;;  %s156_s1 = sshll.u32 %s254_s0, 4  ;;  %s157_s1 = int_to_ptr.vmem [resolvable:$true] %s156_s1 }
  0x1e   :  { %178 = vlog2.f32 %v103_v1  ;;  %s224_s21 = scalar_lea.vmem %s157_s1, 128  ;;  %p229_p11 = scmp.lt.s32.totalorder %s157_s1, %s157_s1 }
  0x1f   :  { %180 = vlog2.f32 %v112_v2  ;;  %p225_p10 = scmp.ne.s32.totalorder %s157_s1, %s224_s21  ;;  %p230_p12 = scmp.lt.s32.totalorder %s224_s21, %s224_s21 }
  0x20   :  { %182 = vlog2.f32 %v113_v3 }
  0x21   :  { %p231_p13 = por %p230_p12, %p229_p11 }
  0x23   :  { %p232_p0 = pnand %p231_p13, %p225_p10 }
  0x2a   :  { %v177_v4 = vpop.eup %176 }
  0x2b   :  { %v179_v5 = vpop.eup %178  ;;  %v107_v6 = vmul.f32 0.6931472, %v177_v4 }
  0x2c   :  { %v181_v7 = vpop.eup %180  ;;  %v109_v8 = vmul.f32 0.6931472, %v179_v5 }
  0x2d   :  { %v183_v9 = vpop.eup %182  ;;  %v110_v10 = vmax.f32 %v107_v6, -100.0  ;;  %v115_v11 = vmul.f32 0.6931472, %v181_v7 }
  0x2e   :  { %v111_v12 = vmax.f32 %v109_v8, -100.0  ;;  %v117_v13 = vmul.f32 0.6931472, %v183_v9 }
  0x2f   :  { %v118_v14 = vmax.f32 %v115_v11, -100.0 }
  0x30   :  { %v119_v16 = vmax.f32 %v117_v13, -100.0 }
  0x31   :  { %v120_v18 = vsub.f32 %v110_v10, %v118_v14 }
  0x32   :  { %v121_v19 = vsub.f32 %v111_v12, %v119_v16 }
  0x33   :  { %v122_v20 = vmul.f32 %v120_v18, %v104_v15 }
  0x34   :  { %v123_v21 = vmul.f32 %v121_v19, %v105_v17 }
  0x35   :  { %v124_v22 = vadd.f32 %v122_v20, %v118_v14 }
  0x36   :  { %v125_v23 = vadd.f32 %v123_v21, %v119_v16 }
  0x38   :  { %v147_v24 = vadd.f32 %v125_v23, %v124_v22 }
  0x3a   :  { %149 = vst [vmem:[#allocation7] sm:$0xff] %v147_v24 }
  0x3b   :  { %235 = shalt.err (!%p232_p0)
}
  0x3c   :  { %159 = dma.vmem_to_hbm [thread:$0]  %s157_s1, 128, %s281_s2, [#allocation4]  }
  0x3d   :  { %248 = dma.done.wait [#allocation4], 128  }
  0x3e   :  { %249 = vsyncadd [#allocation4], 4294967168 }
  0x3f   :  { %163 = vsyncpa [#allocation3], 1 }
  0x40   :  { %164 = vsyncpa [#allocation6], 1 }
  0x41   :  { %165 = vsyncpa [#allocation4], 1 }

</bundles_post_ra>
